<compile_context>
chip_gen: v6e
topology: v6e:2x2x1
jax: 0.10.0
libtpu: 0.0.40
codegen_flags: <defaults>
</compile_context>

<pallas_src>
import jax
import jax.numpy as jnp
from jax.experimental import pallas as pl
from jax.experimental.pallas import tpu as pltpu


def _round_up(x, m):
    return ((x + m - 1) // m) * m


def _cdiv(a, b):
    return (a + b - 1) // b


def _device_params():
    """Best-effort (dual_core, per-stream block byte budget, vmem limit)."""
    try:
        kind = jax.devices()[0].device_kind.lower()
    except Exception:
        kind = ""
    # Dual-TensorCore-per-device parts: v4/v5p (megacore), v7x (2 TCs/chip).
    dual_core = any(t in kind for t in ("v7", "v4", "v5p"))
    is_v7 = "v7" in kind
    per_block = (1 << 20) if is_v7 else (2 << 20)      # bytes per streamed block
    vmem_limit = (32 << 20) if is_v7 else (64 << 20)
    try:
        cap = int(pltpu.get_tpu_info().vmem_capacity_bytes)
        vmem_limit = min(vmem_limit, cap // 2)
    except Exception:
        vmem_limit = 32 << 20                          # conservative fallback
    return dual_core, per_block, vmem_limit


def _make_sdnet_kernel(R, Rr, rows_per_chan, reco_rows_per_batch, nipg,
                       need_mask, with_reco):
    """Fused dice(+reco-L1) partial-sum kernel.

    Grid = (ng, B, nipg).  The output block index depends only on the leading
    ("parallel") group axis, so the output block stays resident across the two
    trailing "arbitrary" axes and is written exactly once, on the final (b, i)
    step of each group.  NOTE: keep (b, i) as the trailing, "arbitrary" axes —
    reordering the grid would silently write back garbage for non-final steps.
    """

    def kernel(*refs):
        if with_reco:
            (seg_ref, yt_ref, rc_ref, im_ref,
             out_ref, num_acc, den_acc, rec_acc) = refs
        else:
            seg_ref, yt_ref, out_ref, num_acc, den_acc = refs

        g = pl.program_id(0)
        b = pl.program_id(1)
        i = pl.program_id(2)

        @pl.when(jnp.logical_and(b == 0, i == 0))
        def _init():
            num_acc[...] = jnp.zeros_like(num_acc)
            den_acc[...] = jnp.zeros_like(den_acc)
            if with_reco:
                rec_acc[...] = jnp.zeros_like(rec_acc)

        # Global row-tile index.  It may run past the valid range on a ragged
        # tail or an uneven 2-TC split; those rows are masked to zero below
        # (the index_map clamps the DMA so it never goes out of bounds).
        t = g * nipg + i

        seg = seg_ref[...].astype(jnp.float32)            # (R, 128)
        yt = yt_ref[...].astype(jnp.float32)              # (R, 128)
        if need_mask:
            lim = rows_per_chan - t * R
            row = jax.lax.broadcasted_iota(jnp.int32, (R, 128), 0)
            valid = row < lim
            seg = jnp.where(valid, seg, 0.0)
            yt = jnp.where(valid, yt, 0.0)

        # Per-tile partial reduce into fixed (1, 128) accumulators (decoupled
        # from tile size; the row reduce is free filler in an HBM-bound kernel).
        num_acc[...] += jnp.sum(seg * yt, axis=0, keepdims=True)
        den_acc[...] += jnp.sum(seg + yt, axis=0, keepdims=True)

        if with_reco:
            rc = rc_ref[...].astype(jnp.float32)          # (Rr, 128)
            im = im_ref[...].astype(jnp.float32)
            diff = rc - im
            if need_mask:
                rlim = reco_rows_per_batch - t * Rr
                rrow = jax.lax.broadcasted_iota(jnp.int32, (Rr, 128), 0)
                diff = jnp.where(rrow < rlim, diff, 0.0)
            rec_acc[...] += jnp.sum(jnp.abs(diff), axis=0, keepdims=True)

        # Write the raw 128-wide partials once per group; the tiny cross-lane
        # reduce / group combine is done by the wrapper in XLA.
        @pl.when(jnp.logical_and(b == pl.num_programs(1) - 1, i == nipg - 1))
        def _finalize():
            rowi = jax.lax.broadcasted_iota(jnp.int32, out_ref.shape, 0)
            res = (jnp.where(rowi == 0, num_acc[...], 0.0)
                   + jnp.where(rowi == 1, den_acc[...], 0.0))
            if with_reco:
                res = res + jnp.where(rowi == 2, rec_acc[...], 0.0)
            out_ref[...] = res

    return kernel


def _sdnet_loss_xla(y_true, seg_pred, reco, z_out, z_out_tilde, mu, logvar,
                    images, train, k1_w, regress_w, dice_w, reco_w):
    """Pure-XLA reference / fallback implementation."""
    smooth = jnp.float32(0.1)
    p = seg_pred[:, 1].astype(jnp.float32).reshape(-1)
    t = y_true.astype(jnp.float32).reshape(-1)
    d_loss = (jnp.float32(1.0)
              - (2.0 * jnp.sum(p * t) + smooth) / (jnp.sum(p) + jnp.sum(t) + smooth))
    if not train:
        return {'dice_loss': d_loss}
    mu32 = mu.astype(jnp.float32)
    lv32 = logvar.astype(jnp.float32)
    k_loss = jnp.mean(-0.5 * jnp.sum(1.0 + lv32 - mu32 * mu32 - jnp.exp(lv32),
                                     axis=-1))
    r1_loss = jnp.mean(jnp.abs(z_out_tilde.astype(jnp.float32)
                               - z_out.astype(jnp.float32)))
    r2_loss = jnp.mean(jnp.abs(reco.astype(jnp.float32)
                               - images.astype(jnp.float32)))
    loss = (d_loss * dice_w + k_loss * k1_w
            + r1_loss * regress_w + r2_loss * reco_w)
    return {'train_loss': loss, 'dice_loss': d_loss, 'k1_loss': k_loss,
            'regress_loss': r1_loss, 'reco_loss': r2_loss}


def sdnet_loss(y_true, seg_pred, reco, z_out, z_out_tilde, mu, logvar, images,
               *, train=True, k1_w=0.01, regress_w=1.0, dice_w=10.0,
               reco_w=1.0, _force_rows_per_tile=None):
    """JAX/Pallas equivalent of SDNetLoss(train).forward(...)."""
    B, C, H, W = seg_pred.shape
    assert C >= 2, "seg_pred must have >= 2 channels (dice uses channel 1)"
    HW = H * W

    # TODO(synk): add an element-offset path for H*W not divisible by 128; the
    # zero-copy (rows, 128) views below require lane alignment, so fall back
    # to plain XLA for those (rare) shapes instead of padding through HBM.
    if HW % 128 != 0:
        return _sdnet_loss_xla(y_true, seg_pred, reco, z_out, z_out_tilde, mu,
                               logvar, images, train, k1_w, regress_w, dice_w,
                               reco_w)

    rows = HW // 128                                   # spatial rows per channel

    # ---- zero-copy lane-dense views -----------------------------------------
    seg_v = seg_pred.reshape(B, C, rows, 128)
    yt_v = y_true.reshape(B, rows, 128)
    if train:
        CR = int(reco.size) // (B * HW)                # reco/images channels
        reco_rows = CR * rows
        rc_v = reco.reshape(B, reco_rows, 128)
        im_v = images.reshape(B, reco_rows, 128)
        widest = max(seg_pred.dtype.itemsize, y_true.dtype.itemsize,
                     CR * reco.dtype.itemsize, CR * images.dtype.itemsize)
    else:
        CR, reco_rows = 0, 0
        widest = max(seg_pred.dtype.itemsize, y_true.dtype.itemsize)

    # ---- generation-aware tiling ---------------------------------------------
    dual_core, per_block_bytes, vmem_limit = _device_params()
    r_cap = max(8, (per_block_bytes // (128 * widest)) // 8 * 8)
    R = rows if rows <= r_cap else r_cap               # mult of 8 or full extent
    if dual_core and rows >= 16:
        # Ensure >= 2 row tiles so the 2-TC split always engages.
        R = min(R, _round_up(_cdiv(rows, 2), 8))
    if _force_rows_per_tile is not None:               # test hook
        R = max(1, min(rows, int(_force_rows_per_tile)))
        if R < rows:
            R = max(8, (R // 8) * 8)
    ni = _cdiv(rows, R)                                # valid row tiles / channel
    ng = 2 if (dual_core and ni >= 2) else 1           # parallel groups
    nipg = _cdiv(ni, ng)                               # row tiles per group
    need_mask = (ng * nipg * R != rows)                # ragged tail / uneven split
    Rr = CR * R                                        # reco rows per tile

    def seg_map(g, b, i):
        # Channel 1 selected here (block index 1 along the channel axis); the
        # row-tile index is clamped so the DMA never reads out of bounds.
        return (b, 1, jnp.minimum(g * nipg + i, ni - 1), 0)

    def row_map(g, b, i):
        return (b, jnp.minimum(g * nipg + i, ni - 1), 0)

    in_specs = [pl.BlockSpec((None, None, R, 128), seg_map),
                pl.BlockSpec((None, R, 128), row_map)]
    ins = (seg_v, yt_v)
    scratch = [pltpu.VMEM((1, 128), jnp.float32),      # dice numerator acc
               pltpu.VMEM((1, 128), jnp.float32)]      # dice denominator acc
    if train:
        in_specs += [pl.BlockSpec((None, Rr, 128), row_map),
                     pl.BlockSpec((None, Rr, 128), row_map)]
        ins = ins + (rc_v, im_v)
        scratch.append(pltpu.VMEM((1, 128), jnp.float32))   # reco L1 acc

    out_specs = pl.BlockSpec((8, 128), lambda g, b, i: (g, 0))

    kern = _make_sdnet_kernel(R, Rr, rows, reco_rows, nipg, need_mask,
                              with_reco=train)

    bytes_in = (B * HW * seg_pred.dtype.itemsize           # only channel 1 read
                + int(y_true.size) * y_true.dtype.itemsize)
    if train:
        bytes_in += (int(reco.size) * reco.dtype.itemsize
                     + int(images.size) * images.dtype.itemsize)
    cost = pl.CostEstimate(
        flops=int(4 * B * HW + (3 * B * CR * HW if train else 0)),
        transcendentals=0,
        bytes_accessed=int(bytes_in + ng * 8 * 128 * 4))

    raw = pl.pallas_call(
        kern,
        out_shape=jax.ShapeDtypeStruct((ng * 8, 128), jnp.float32),
        grid_spec=pltpu.PrefetchScalarGridSpec(
            num_scalar_prefetch=0,
            grid=(ng, B, nipg),
            in_specs=in_specs,
            out_specs=out_specs,
            scratch_shapes=scratch),
        compiler_params=pltpu.CompilerParams(
            dimension_semantics=("parallel", "arbitrary", "arbitrary"),
            vmem_limit_bytes=int(vmem_limit)),
        cost_estimate=cost,
    )(*ins)

    # ---- cheap scalar finalization in XLA (combine per-group lane partials) --
    sums = raw.reshape(ng, 8, 128).sum(axis=(0, 2))
    inter, den = sums[0], sums[1]
    smooth = jnp.float32(0.1)
    d_loss = jnp.float32(1.0) - (2.0 * inter + smooth) / (den + smooth)
    if not train:
        return {'dice_loss': d_loss}

    rsum = sums[2]
    # Tiny [B, Z] terms: plain XLA (O(B*Z)), kept out of the kernel on purpose.
    mu32 = mu.astype(jnp.float32)
    lv32 = logvar.astype(jnp.float32)
    k_loss = jnp.mean(-0.5 * jnp.sum(1.0 + lv32 - mu32 * mu32 - jnp.exp(lv32),
                                     axis=-1))
    r1_loss = jnp.mean(jnp.abs(z_out_tilde.astype(jnp.float32)
                               - z_out.astype(jnp.float32)))
    r2_loss = rsum / jnp.float32(int(reco.size))
    train_loss = (d_loss * dice_w + k_loss * k1_w
                  + r1_loss * regress_w + r2_loss * reco_w)
    return {'train_loss': train_loss, 'dice_loss': d_loss, 'k1_loss': k_loss,
            'regress_loss': r1_loss, 'reco_loss': r2_loss}


def _make_inputs(key, B, C, H, W, Z):
    ks = jax.random.split(key, 8)
    y_true = (jax.random.uniform(ks[0], (B, H, W)) > 0.5).astype(jnp.float32)
    seg_pred = jax.nn.softmax(jax.random.normal(ks[1], (B, C, H, W)), axis=1)
    images = jax.random.normal(ks[2], (B, 1, H, W), dtype=jnp.float32)
    reco = images + 0.1 * jax.random.normal(ks[3], (B, 1, H, W), dtype=jnp.float32)
    z_out = jax.random.normal(ks[4], (B, Z), dtype=jnp.float32)
    z_out_tilde = z_out + 0.05 * jax.random.normal(ks[5], (B, Z), dtype=jnp.float32)
    mu = 0.3 * jax.random.normal(ks[6], (B, Z), dtype=jnp.float32)
    logvar = 0.1 * jax.random.normal(ks[7], (B, Z), dtype=jnp.float32)
    return y_true, seg_pred, reco, z_out, z_out_tilde, mu, logvar, images


def _check(got, ref):
    for name in ref:
        a, b = float(got[name]), float(ref[name])
        assert abs(a - b) <= 1e-4 + 1e-4 * abs(b), (name, a, b)


if __name__ == "__main__":
    key = jax.random.PRNGKey(0)
    k1, k2 = jax.random.split(key)

    # ---- test 1: small shapes, train + eval paths ---------------------------
    args1 = _make_inputs(k1, B=2, C=2, H=16, W=16, Z=8)
    losses = jax.block_until_ready(sdnet_loss(*args1, train=True))
    ref = _sdnet_loss_xla(*args1, train=True, k1_w=0.01, regress_w=1.0,
                          dice_w=10.0, reco_w=1.0)
    _check(losses, ref)

    eval_losses = jax.block_until_ready(sdnet_loss(*args1, train=False))
    eval_ref = _sdnet_loss_xla(*args1, train=False, k1_w=0.01, regress_w=1.0,
                               dice_w=10.0, reco_w=1.0)
    _check(eval_losses, eval_ref)

    # ---- test 2: exercise the ragged-tile / in-kernel masking path ----------
    args2 = _make_inputs(k2, B=2, C=2, H=48, W=48, Z=8)   # rows=18, force R=8
    losses2 = jax.block_until_ready(
        sdnet_loss(*args2, train=True, _force_rows_per_tile=8))
    ref2 = _sdnet_loss_xla(*args2, train=True, k1_w=0.01, regress_w=1.0,
                           dice_w=10.0, reco_w=1.0)
    _check(losses2, ref2)

    print("KERNEL_OK")
</pallas_src>

<mosaic_0001>
module attributes {stable_mosaic.version = 11 : i64} {
  func.func @kernel(%arg0: i32, %arg1: i32, %arg2: i32, %arg3: memref<1x1x2x128xf32, #tpu.memory_space<vmem>>, %arg4: memref<1x2x128xf32, #tpu.memory_space<vmem>>, %arg5: memref<1x2x128xf32, #tpu.memory_space<vmem>>, %arg6: memref<1x2x128xf32, #tpu.memory_space<vmem>>, %arg7: memref<8x128xf32, #tpu.memory_space<vmem>>, %arg8: memref<1x128xf32, #tpu.memory_space<vmem>>, %arg9: memref<1x128xf32, #tpu.memory_space<vmem>>, %arg10: memref<1x128xf32, #tpu.memory_space<vmem>>) attributes {dimension_semantics = [#tpu.dimension_semantics<parallel>, #tpu.dimension_semantics<arbitrary>, #tpu.dimension_semantics<arbitrary>], iteration_bounds = array<i64: 1, 2, 1>, scalar_prefetch = 0 : i64, scratch_operands = 3 : i64, tpu.core_type = #tpu.core_type<tc>, window_params = [{transform_indices = @transform_0, window_bounds = array<i64: 1, 1, 2, 128>}, {transform_indices = @transform_1, window_bounds = array<i64: 1, 2, 128>}, {transform_indices = @transform_2, window_bounds = array<i64: 1, 2, 128>}, {transform_indices = @transform_3, window_bounds = array<i64: 1, 2, 128>}, {transform_indices = @transform_4, window_bounds = array<i64: 8, 128>}]} {
    %c0_i32 = arith.constant 0 : i32
    %0 = arith.cmpi eq, %arg1, %c0_i32 : i32
    %c0_i32_0 = arith.constant 0 : i32
    %1 = arith.cmpi eq, %arg2, %c0_i32_0 : i32
    %2 = arith.andi %0, %1 : i1
    %3 = arith.extui %2 : i1 to i32
    %c0_i32_1 = arith.constant 0 : i32
    %4 = arith.cmpi ne, %3, %c0_i32_1 : i32
    scf.if %4 {
      %cst_30 = arith.constant 0.000000e+00 : f32
      %37 = vector.broadcast %cst_30 : f32 to vector<1x128xf32>
      %c0_31 = arith.constant 0 : index
      %c0_32 = arith.constant 0 : index
      %38 = vector.load %arg8[%c0_31, %c0_32] : memref<1x128xf32, #tpu.memory_space<vmem>>, vector<1x128xf32>
      tpu.vector_store %arg8[%c0_31, %c0_32], %37 {strides = array<i32>} : memref<1x128xf32, #tpu.memory_space<vmem>>, vector<1x128xf32>,
      %cst_33 = arith.constant 0.000000e+00 : f32
      %39 = vector.broadcast %cst_33 : f32 to vector<1x128xf32>
      %c0_34 = arith.constant 0 : index
      %c0_35 = arith.constant 0 : index
      %40 = vector.load %arg9[%c0_34, %c0_35] : memref<1x128xf32, #tpu.memory_space<vmem>>, vector<1x128xf32>
      tpu.vector_store %arg9[%c0_34, %c0_35], %39 {strides = array<i32>} : memref<1x128xf32, #tpu.memory_space<vmem>>, vector<1x128xf32>,
      %cst_36 = arith.constant 0.000000e+00 : f32
      %41 = vector.broadcast %cst_36 : f32 to vector<1x128xf32>
      %c0_37 = arith.constant 0 : index
      %c0_38 = arith.constant 0 : index
      %42 = vector.load %arg10[%c0_37, %c0_38] : memref<1x128xf32, #tpu.memory_space<vmem>>, vector<1x128xf32>
      tpu.vector_store %arg10[%c0_37, %c0_38], %41 {strides = array<i32>} : memref<1x128xf32, #tpu.memory_space<vmem>>, vector<1x128xf32>,
    } else {
    }
    %c0 = arith.constant 0 : index
    %c0_2 = arith.constant 0 : index
    %c0_3 = arith.constant 0 : index
    %c0_4 = arith.constant 0 : index
    %5 = vector.load %arg3[%c0, %c0_2, %c0_3, %c0_4] : memref<1x1x2x128xf32, #tpu.memory_space<vmem>>, vector<1x1x2x128xf32>
    %6 = vector.shape_cast %5 : vector<1x1x2x128xf32> to vector<2x128xf32>
    %c0_5 = arith.constant 0 : index
    %c0_6 = arith.constant 0 : index
    %c0_7 = arith.constant 0 : index
    %7 = vector.load %arg4[%c0_5, %c0_6, %c0_7] : memref<1x2x128xf32, #tpu.memory_space<vmem>>, vector<1x2x128xf32>
    %8 = vector.shape_cast %7 : vector<1x2x128xf32> to vector<2x128xf32>
    %c0_8 = arith.constant 0 : index
    %c0_9 = arith.constant 0 : index
    %9 = vector.load %arg8[%c0_8, %c0_9] : memref<1x128xf32, #tpu.memory_space<vmem>>, vector<1x128xf32>
    %10 = arith.mulf %6, %8 : vector<2x128xf32>
    %cst = arith.constant dense<0.000000e+00> : vector<128xf32>
    %11 = vector.multi_reduction <add>, %10, %cst [0] : vector<2x128xf32> to vector<128xf32>
    %12 = vector.shape_cast %11 : vector<128xf32> to vector<1x128xf32>
    %13 = arith.addf %9, %12 : vector<1x128xf32>
    %c0_10 = arith.constant 0 : index
    %c0_11 = arith.constant 0 : index
    %14 = vector.load %arg8[%c0_10, %c0_11] : memref<1x128xf32, #tpu.memory_space<vmem>>, vector<1x128xf32>
    tpu.vector_store %arg8[%c0_10, %c0_11], %13 {strides = array<i32>} : memref<1x128xf32, #tpu.memory_space<vmem>>, vector<1x128xf32>,
    %c0_12 = arith.constant 0 : index
    %c0_13 = arith.constant 0 : index
    %15 = vector.load %arg9[%c0_12, %c0_13] : memref<1x128xf32, #tpu.memory_space<vmem>>, vector<1x128xf32>
    %16 = arith.addf %6, %8 : vector<2x128xf32>
    %cst_14 = arith.constant dense<0.000000e+00> : vector<128xf32>
    %17 = vector.multi_reduction <add>, %16, %cst_14 [0] : vector<2x128xf32> to vector<128xf32>
    %18 = vector.shape_cast %17 : vector<128xf32> to vector<1x128xf32>
    %19 = arith.addf %15, %18 : vector<1x128xf32>
    %c0_15 = arith.constant 0 : index
    %c0_16 = arith.constant 0 : index
    %20 = vector.load %arg9[%c0_15, %c0_16] : memref<1x128xf32, #tpu.memory_space<vmem>>, vector<1x128xf32>
    tpu.vector_store %arg9[%c0_15, %c0_16], %19 {strides = array<i32>} : memref<1x128xf32, #tpu.memory_space<vmem>>, vector<1x128xf32>,
    %c0_17 = arith.constant 0 : index
    %c0_18 = arith.constant 0 : index
    %c0_19 = arith.constant 0 : index
    %21 = vector.load %arg5[%c0_17, %c0_18, %c0_19] : memref<1x2x128xf32, #tpu.memory_space<vmem>>, vector<1x2x128xf32>
    %22 = vector.shape_cast %21 : vector<1x2x128xf32> to vector<2x128xf32>
    %c0_20 = arith.constant 0 : index
    %c0_21 = arith.constant 0 : index
    %c0_22 = arith.constant 0 : index
    %23 = vector.load %arg6[%c0_20, %c0_21, %c0_22] : memref<1x2x128xf32, #tpu.memory_space<vmem>>, vector<1x2x128xf32>
    %24 = vector.shape_cast %23 : vector<1x2x128xf32> to vector<2x128xf32>
    %25 = arith.subf %22, %24 : vector<2x128xf32>
    %c0_23 = arith.constant 0 : index
    %c0_24 = arith.constant 0 : index
    %26 = vector.load %arg10[%c0_23, %c0_24] : memref<1x128xf32, #tpu.memory_space<vmem>>, vector<1x128xf32>
    %27 = math.absf %25 : vector<2x128xf32>
    %cst_25 = arith.constant dense<0.000000e+00> : vector<128xf32>
    %28 = vector.multi_reduction <add>, %27, %cst_25 [0] : vector<2x128xf32> to vector<128xf32>
    %29 = vector.shape_cast %28 : vector<128xf32> to vector<1x128xf32>
    %30 = arith.addf %26, %29 : vector<1x128xf32>
    %c0_26 = arith.constant 0 : index
    %c0_27 = arith.constant 0 : index
    %31 = vector.load %arg10[%c0_26, %c0_27] : memref<1x128xf32, #tpu.memory_space<vmem>>, vector<1x128xf32>
    tpu.vector_store %arg10[%c0_26, %c0_27], %30 {strides = array<i32>} : memref<1x128xf32, #tpu.memory_space<vmem>>, vector<1x128xf32>,
    %c1_i32 = arith.constant 1 : i32
    %32 = arith.cmpi eq, %arg1, %c1_i32 : i32
    %c0_i32_28 = arith.constant 0 : i32
    %33 = arith.cmpi eq, %arg2, %c0_i32_28 : i32
    %34 = arith.andi %32, %33 : i1
    %35 = arith.extui %34 : i1 to i32
    %c0_i32_29 = arith.constant 0 : i32
    %36 = arith.cmpi ne, %35, %c0_i32_29 : i32
    scf.if %36 {
      %37 = tpu.iota {dimensions = array<i32: 0>} : vector<8x128xi32>
      %c0_i32_30 = arith.constant 0 : i32
      %38 = vector.broadcast %c0_i32_30 : i32 to vector<8x128xi32>
      %39 = arith.cmpi eq, %37, %38 : vector<8x128xi32>
      %c0_31 = arith.constant 0 : index
      %c0_32 = arith.constant 0 : index
      %40 = vector.load %arg8[%c0_31, %c0_32] : memref<1x128xf32, #tpu.memory_space<vmem>>, vector<1x128xf32>
      %cst_33 = arith.constant 0.000000e+00 : f32
      %41 = vector.shape_cast %40 : vector<1x128xf32> to vector<1x128xf32>
      %42 = vector.broadcast %41 : vector<1x128xf32> to vector<8x128xf32>
      %43 = vector.broadcast %cst_33 : f32 to vector<8x128xf32>
      %44 = arith.select %39, %42, %43 : vector<8x128xi1>, vector<8x128xf32>
      %c1_i32_34 = arith.constant 1 : i32
      %45 = vector.broadcast %c1_i32_34 : i32 to vector<8x128xi32>
      %46 = arith.cmpi eq, %37, %45 : vector<8x128xi32>
      %c0_35 = arith.constant 0 : index
      %c0_36 = arith.constant 0 : index
      %47 = vector.load %arg9[%c0_35, %c0_36] : memref<1x128xf32, #tpu.memory_space<vmem>>, vector<1x128xf32>
      %cst_37 = arith.constant 0.000000e+00 : f32
      %48 = vector.shape_cast %47 : vector<1x128xf32> to vector<1x128xf32>
      %49 = vector.broadcast %48 : vector<1x128xf32> to vector<8x128xf32>
      %50 = vector.broadcast %cst_37 : f32 to vector<8x128xf32>
      %51 = arith.select %46, %49, %50 : vector<8x128xi1>, vector<8x128xf32>
      %52 = arith.addf %44, %51 : vector<8x128xf32>
      %c2_i32 = arith.constant 2 : i32
      %53 = vector.broadcast %c2_i32 : i32 to vector<8x128xi32>
      %54 = arith.cmpi eq, %37, %53 : vector<8x128xi32>
      %c0_38 = arith.constant 0 : index
      %c0_39 = arith.constant 0 : index
      %55 = vector.load %arg10[%c0_38, %c0_39] : memref<1x128xf32, #tpu.memory_space<vmem>>, vector<1x128xf32>
      %cst_40 = arith.constant 0.000000e+00 : f32
      %56 = vector.shape_cast %55 : vector<1x128xf32> to vector<1x128xf32>
      %57 = vector.broadcast %56 : vector<1x128xf32> to vector<8x128xf32>
      %58 = vector.broadcast %cst_40 : f32 to vector<8x128xf32>
      %59 = arith.select %54, %57, %58 : vector<8x128xi1>, vector<8x128xf32>
      %60 = arith.addf %52, %59 : vector<8x128xf32>
      %c0_41 = arith.constant 0 : index
      %c0_42 = arith.constant 0 : index
      %61 = vector.load %arg7[%c0_41, %c0_42] : memref<8x128xf32, #tpu.memory_space<vmem>>, vector<8x128xf32>
      tpu.vector_store %arg7[%c0_41, %c0_42], %60 {strides = array<i32>} : memref<8x128xf32, #tpu.memory_space<vmem>>, vector<8x128xf32>,
    } else {
    }
    return
  }
  func.func @transform_0(%arg0: i32, %arg1: i32, %arg2: i32) -> (i32, i32, i32, i32) {
    %c1_i32 = arith.constant 1 : i32
    %0 = arith.muli %arg0, %c1_i32 : i32
    %1 = arith.addi %0, %arg2 : i32
    %c0_i32 = arith.constant 0 : i32
    %2 = arith.minsi %1, %c0_i32 : i32
    %c1_i32_0 = arith.constant 1 : i32
    %c0_i32_1 = arith.constant 0 : i32
    %c0_i32_2 = arith.constant 0 : i32
    return %arg1, %c1_i32_0, %2, %c0_i32_1 : i32, i32, i32, i32
  }
  func.func @transform_1(%arg0: i32, %arg1: i32, %arg2: i32) -> (i32, i32, i32) {
    %c1_i32 = arith.constant 1 : i32
    %0 = arith.muli %arg0, %c1_i32 : i32
    %1 = arith.addi %0, %arg2 : i32
    %c0_i32 = arith.constant 0 : i32
    %2 = arith.minsi %1, %c0_i32 : i32
    %c0_i32_0 = arith.constant 0 : i32
    %c0_i32_1 = arith.constant 0 : i32
    return %arg1, %2, %c0_i32_0 : i32, i32, i32
  }
  func.func @transform_2(%arg0: i32, %arg1: i32, %arg2: i32) -> (i32, i32, i32) {
    %c1_i32 = arith.constant 1 : i32
    %0 = arith.muli %arg0, %c1_i32 : i32
    %1 = arith.addi %0, %arg2 : i32
    %c0_i32 = arith.constant 0 : i32
    %2 = arith.minsi %1, %c0_i32 : i32
    %c0_i32_0 = arith.constant 0 : i32
    %c0_i32_1 = arith.constant 0 : i32
    return %arg1, %2, %c0_i32_0 : i32, i32, i32
  }
  func.func @transform_3(%arg0: i32, %arg1: i32, %arg2: i32) -> (i32, i32, i32) {
    %c1_i32 = arith.constant 1 : i32
    %0 = arith.muli %arg0, %c1_i32 : i32
    %1 = arith.addi %0, %arg2 : i32
    %c0_i32 = arith.constant 0 : i32
    %2 = arith.minsi %1, %c0_i32 : i32
    %c0_i32_0 = arith.constant 0 : i32
    %c0_i32_1 = arith.constant 0 : i32
    return %arg1, %2, %c0_i32_0 : i32, i32, i32
  }
  func.func @transform_4(%arg0: i32, %arg1: i32, %arg2: i32) -> (i32, i32) {
    %c0_i32 = arith.constant 0 : i32
    %c0_i32_0 = arith.constant 0 : i32
    return %arg0, %c0_i32 : i32, i32
  }
}

</mosaic_0001>

<bundles_post_ra>
// kernel: tpu_custom_call.1
= control target key start
LH: loop header
LB: loop body
LE: loop exit
PB: predicated region body
PF: predicated region fallthrough
CT: control target
= control target key end

     0   :  { %9 = vsyncpa [#allocation6], 0  ;;  %s1070_s0 = inlined_call_operand.hbm [shape: f32[2,2,2,128], index: 0, kind: input, shape index: {}]   ;;  %s1071_s1 = inlined_call_operand.hbm [shape: f32[2,2,128], index: 1, kind: input, shape index: {}]   ;;  %s1072_s2 = inlined_call_operand.hbm [shape: f32[2,2,128], index: 2, kind: input, shape index: {}]   ;;  %s1073_s3 = inlined_call_operand.vmem [shape: f32[2,2,128], index: 3, kind: input, shape index: {}]   ;;  %s1074_s4 = inlined_call_operand.hbm [shape: f32[8,128], index: 4, kind: output, shape index: {}]  }
   0x1   :  { %11 = vsyncpa [#allocation6 + $0x1], 0 }
   0x2   :  { %12 = vsyncpa [#allocation9], 0 }
   0x3   :  { %14 = vsyncpa [#allocation9 + $0x1], 0 }
   0x4   :  { %15 = vsyncpa [#allocation7], 0  ;;  %s912_s15 = smov 0   ;;  %s914_s16 = smov 0  }
   0x5   :  { %s916_s17 = smov 0   ;;  %s918_s18 = smov 0  }
   0x6   :  { %s920_s19 = smov 0   ;;  %s922_s20 = smov 0  }
   0x7 LB: > { %s941_s21 = sadd.s32 4294967295, %s880_s20   ;;  %s36_s22 = sadd.s32 1, %s876_s19  ;;  %s880_s20 = sphi %s922_s20, %s21_s20   ;;  %s876_s19 = sphi %s920_s19, %s1084_s19   ;;  %s872_s18 = sphi %s918_s18, %s1083_s18   ;;  %s868_s17 = sphi %s916_s17, %s1082_s17   ;;  %s864_s16 = sphi %s914_s16, %s1081_s16   ;;  %s860_s15 = sphi %s912_s15, %s1080_s15  }
   0x8   : > { %p38_p0 = scmp.ge.s32.totalorder %s36_s22, 2  ;;  %s55_s23 = sadd.s32 1, %s868_s17 }
   0x9   : > { %p62_p1 = scmp.ne.s32.totalorder %s868_s17, %s864_s16  ;;  %p63_p2 = scmp.eq.s32.totalorder %s880_s20, 0 }
   0xa   : > { %s1086_s22 = smov (%p38_p0, %s36_s22), 0  ;;  %p68_p4 = scmp.ne.s32.totalorder %s864_s16, %s860_s15 }
   0xb   : > { %p64_p3 = por %p63_p2, %p62_p1  ;;  %s50_s24 = ssub.s32 %s876_s19, %s1086_s22 }
   0xc   : > { %p69_p5 = scmp.eq.s32.totalorder %s941_s21, 0  ;;  %p53_p6 = scmp.eq.s32.totalorder %s50_s24, 0 }
   0xd   : > { %p660_p8 = scmp.lt.s32.totalorder %s880_s20, 2  ;;  %s220_s27 = sand.u32 1, %s868_s17  }
   0xe   : > { %p954_p7 = por %p69_p5, %p68_p4  ;;  %s969_s29 = sshll.u32 %s220_s27, 1 }
   0xf   : > { %s960_s26 = scalar_select %p53_p6, %s868_s17, %s55_s23  }
  0x10   : > { %p963_p9 = pnand %p660_p8, %p64_p3  ;;  %s244_s30 = sand.u32 1, %s880_s20  }
  0x11   : > { %s1075_s5 = sshll.u32 %s876_s19, 5  ;;  %s248_s9 = scalar_lea.vmem [#allocation8], %s969_s29 }
  0x12   : > { %s257_s8 = scalar_lea.hbm %s1071_s1, %s1075_s5  ;;  %s259_s10 = sshll.u32 %s248_s9, 4  ;;  %s260_s10 = int_to_ptr.vmem [resolvable:$true] %s259_s10 }
  0x13   : > { %s979_s11 = scalar_lea.sflag [#allocation9], %s244_s30  ;;  %p715_p10 = pneg %p963_p9 }
  0x14   : > { %s726_s12 = scalar_lea.vmem %s260_s10, 32  ;;  %s882_s13 = smov [#allocation8]  }
  0x15   : > { %p727_p11 = scmp.ne.s32.totalorder %s260_s10, %s726_s12  ;;  %s731_s14 = sshll.u32 %s882_s13, 4  ;;  %s732_s14 = int_to_ptr.vmem [resolvable:$false] %s731_s14 }
  0x16   : > { %s733_s15 = scalar_lea.vmem %s732_s14, 64  ;;  %p734_p0 = scmp.lt.s32.totalorder %s260_s10, %s732_s14 }
  0x17   : > { %p729_p12 = pnand %p727_p11, %p715_p10  ;;  %p735_p1 = scmp.lt.s32.totalorder %s733_s15, %s726_s12 }
  0x19   : > { %p730_p13 = pneg %p729_p12  ;;  %p736_p2 = por %p735_p1, %p734_p0 }
  0x1b   : > { %p737_p3 = pnand %p736_p2, %p730_p13 }
  0x1d   : > { %740 = shalt.err (!%p737_p3)
}
  0x1e   : > { %656 = dma.hbm_to_vmem [thread:$0]  (!%p963_p9), %s257_s8, 32, %s260_s10, %s979_s11  }
  0x1f   : > { %p623_p4 = scmp.ge.s32.totalorder %s880_s20, 1  ;;  %p302_p5 = scmp.lt.s32.totalorder %s880_s20, 3 }
  0x20   : > { %s637_s24 = sshll.u32 %s876_s19, 6  ;;  %s224_s9 = scalar_lea.vmem [#allocation5], %s969_s29 }
  0x21   : > { %p991_p6 = pnand %p623_p4, %p302_p5  ;;  %s514_s7 = scalar_lea.hbm %s1070_s0, %s637_s24 }
  0x22   : > { %s237_s12 = sshll.u32 %s224_s9, 4  ;;  %s515_s13 = scalar_lea.hbm %s514_s7, 32  ;;  %s238_s12 = int_to_ptr.vmem [resolvable:$true] %s237_s12 }
  0x23   : > { %s221_s14 = scalar_lea.sflag [#allocation6], %s220_s27  ;;  %s754_s15 = scalar_lea.vmem %s238_s12, 32 }
  0x24   : > { %p755_p8 = scmp.ne.s32.totalorder %s238_s12, %s754_s15  ;;  %s883_s8 = smov [#allocation5]  }
  0x25   : > { %s759_s10 = sshll.u32 %s883_s8, 4  ;;  %s760_s10 = int_to_ptr.vmem [resolvable:$false] %s759_s10 }
  0x26   : > { %p757_p11 = pnand %p755_p8, %p715_p10  ;;  %s761_s5 = scalar_lea.vmem %s760_s10, 64 }
  0x27   : > { %p762_p13 = scmp.lt.s32.totalorder %s238_s12, %s760_s10  ;;  %p763_p0 = scmp.lt.s32.totalorder %s761_s5, %s754_s15 }
  0x28   : > { %p758_p12 = pneg %p757_p11 }
  0x29   : > { %p764_p1 = por %p763_p0, %p762_p13 }
  0x2b   : > { %p765_p2 = pnand %p764_p1, %p758_p12 }
  0x2d   : > { %768 = shalt.err (!%p765_p2)
}
  0x2e   : > { %653 = dma.hbm_to_vmem [thread:$0]  (!%p963_p9), %s515_s13, 32, %s238_s12, %s221_s14  }
  0x2f   : > { %s1079_s27 = sshll.u32 %s876_s19, 5  ;;  %s270_s7 = scalar_lea.vmem [#allocation10], %s969_s29 }
  0x30   : > { %s279_s6 = scalar_lea.hbm %s1072_s2, %s1079_s27  ;;  %s281_s9 = sshll.u32 %s270_s7, 4  ;;  %s282_s9 = int_to_ptr.vmem [resolvable:$true] %s281_s9 }
  0x31   : > { %s783_s8 = scalar_lea.vmem %s282_s9, 32  ;;  %s884_s5 = smov [#allocation10]  }
  0x32   : > { %p784_p3 = scmp.ne.s32.totalorder %s282_s9, %s783_s8  ;;  %s788_s15 = sshll.u32 %s884_s5, 4  ;;  %s789_s15 = int_to_ptr.vmem [resolvable:$false] %s788_s15 }
  0x33   : > { %s790_s10 = scalar_lea.vmem %s789_s15, 64  ;;  %p791_p8 = scmp.lt.s32.totalorder %s282_s9, %s789_s15 }
  0x34   : > { %p786_p4 = pnand %p784_p3, %p715_p10  ;;  %p792_p11 = scmp.lt.s32.totalorder %s790_s10, %s783_s8 }
  0x36   : > { %p787_p5 = pneg %p786_p4  ;;  %p793_p12 = por %p792_p11, %p791_p8 }
  0x38   : > { %p794_p13 = pnand %p793_p12, %p787_p5 }
  0x3a   : > { %797 = shalt.err (!%p794_p13)
}
  0x3b   : > { %659 = dma.hbm_to_vmem [thread:$0]  (!%p963_p9), %s279_s6, 32, %s282_s9, %s979_s11  }
  0x3c   : > { %306 = sbr.rel (%p991_p6) target bundleno = 125 (0x7d), region = 36  ;;  %s308_s29 = sand.u32 (!%p991_p6), 1, %s864_s16  }
  0x3d   : > { %s624_s12 = sshll.u32 (!%p991_p6), %s308_s29, 1  ;;  %s309_s13 = scalar_lea.sflag (!%p991_p6), [#allocation6], %s308_s29 }
  0x3e   : > { %s312_s14 = scalar_lea.vmem (!%p991_p6), [#allocation5], %s624_s12 }
  0x41   : > { %847 = dma.done.wait (%p954_p7), %s309_s13, 32  }
  0x42   : > { %849 = vsyncadd (%p954_p7), %s309_s13, 4294967264  ;;  %s317_s27 = sand.u32 1, %s941_s21   ;;  %s321_s24 = scalar_lea.vmem [#allocation8], %s624_s12 }
  0x43   : > { %s318_s28 = scalar_lea.sflag [#allocation9], %s317_s27 }
  0x44   : > { %851 = dma.done.wait (%p954_p7), %s318_s28, 64  }
  0x45   : > { %853 = vsyncadd (%p954_p7), %s318_s28, 4294967232  ;;  %p382_p9 = scmp.lt.s32.totalorder %s872_s18, 1  ;;  %p392_p10 = scmp.eq.s32.totalorder %s872_s18, 0 }
  0x46   : > { %s330_s9 = scalar_lea.vmem [#allocation10], %s624_s12  ;;  %v885_v0 = vmov (%p392_p10), 0.0  }
  0x47   : > { %s383_s11 = scalar_select %p382_p9, %s872_s18, 1  ;;  %398 = vst [vmem:[#allocation2] sm:$0x1] (%p392_p10), %v885_v0  ;;  %399 = vst [vmem:[#allocation3] sm:$0x1] (%p392_p10), %v885_v0 }
  0x48   : > { %397 = sbr.rel (!%p392_p10) target bundleno = 77 (0x4d), region = 52  ;;  %400 = vst [vmem:[#allocation4] sm:$0x1] (%p392_p10), %v885_v0 }
  0x49   : > { %s627_s23 = sshll.u32 %s383_s11, 1 }
  0x4a   : > { %s388_s7 = scalar_lea.vmem %s1073_s3, %s627_s23 }
  0x4d PF: > { %v401_v1 = vld [vmem:[%s312_s14] sm:$0x3]  ;;  %v402_v2 = vld [vmem:[%s321_s24] sm:$0x3]  ;;  %vm405_vm0 = vcmask 1041408   ;;  %p440_p7 = scmp.eq.s32.totalorder %s872_s18, 1 }
  0x4e   : > { %v404_v3 = vmul.f32 %v402_v2, %v401_v1  ;;  %v416_v4 = vadd.f32 %v402_v2, %v401_v1  ;;  %v426_v5 = vld [vmem:[%s330_s9] sm:$0x3]  ;;  %v427_v6 = vld [vmem:[%s388_s7] sm:$0x3]  ;;  %v445_v36 = vlaneseq (%p440_p7) }
  0x4f   : > { %v428_v9 = vsub.f32 %v426_v5, %v427_v6  ;;  %v403_v25 = vld [vmem:[#allocation2] sm:$0x1]  ;;  %v415_v26 = vld [vmem:[#allocation3] sm:$0x1]  ;;  %v429_v33 = vld [vmem:[#allocation4] sm:$0x1] }
  0x50   : > { %v406_v7 = vsel %vm405_vm0, %v404_v3, 0.0  ;;  %v417_v8 = vsel %vm405_vm0, %v416_v4, 0.0  ;;  %v446_v38 = vshrl.u32 (%p440_p7), %v445_v36, 7 }
  0x51   : > { %v407_v10 = vrot.slane %v406_v7, 4  ;;  %v418_v11 = vrot.slane %v417_v8, 4  ;;  %v430_v12 = vand.u32 2147483647, %v428_v9 }
  0x52   : > { %vm447_vm1 = vcmp.eq.s32.totalorder (%p440_p7), %v446_v38, 0  ;;  %vm456_vm2 = vcmp.eq.s32.totalorder (%p440_p7), %v446_v38, 1  ;;  %vm466_vm3 = vcmp.eq.s32.totalorder (%p440_p7), %v446_v38, 2 }
  0x53   : > { %v408_v13 = vadd.f32 %v407_v10, %v406_v7  ;;  %v419_v14 = vadd.f32 %v418_v11, %v417_v8  ;;  %v431_v15 = vsel %vm405_vm0, %v430_v12, 0.0 }
  0x54   : > { %v432_v18 = vrot.slane %v431_v15, 4 }
  0x55   : > { %v409_v16 = vrot.slane %v408_v13, 2  ;;  %v420_v17 = vrot.slane %v419_v14, 2 }
  0x56   : > { %v433_v21 = vadd.f32 %v432_v18, %v431_v15 }
  0x57   : > { %v410_v19 = vadd.f32 %v409_v16, %v408_v13  ;;  %v421_v20 = vadd.f32 %v420_v17, %v419_v14 }
  0x58   : > { %v434_v24 = vrot.slane %v433_v21, 2 }
  0x59   : > { %v411_v22 = vrot.slane %v410_v19, 1  ;;  %v422_v23 = vrot.slane %v421_v20, 1 }
  0x5a   : > { %v435_v29 = vadd.f32 %v434_v24, %v433_v21 }
  0x5b   : > { %v412_v27 = vadd.f32 %v411_v22, %v410_v19  ;;  %v423_v28 = vadd.f32 %v422_v23, %v421_v20 }
  0x5c   : > { %v436_v32 = vrot.slane %v435_v29, 1 }
  0x5d   : > { %v413_v30 = vadd.f32 %v412_v27, %v403_v25  ;;  %v424_v31 = vadd.f32 %v423_v28, %v415_v26 }
  0x5e   : > { %v437_v34 = vadd.f32 %v436_v32, %v435_v29  ;;  %444 = sbr.rel (!%p440_p7) target bundleno = 110 (0x6e), region = 56 }
  0x5f   : > { %414 = vst [vmem:[#allocation2] sm:$0x1] %v413_v30  ;;  %425 = vst [vmem:[#allocation3] sm:$0x1] %v424_v31 }
  0x60   : > { %v438_v35 = vadd.f32 %v437_v34, %v429_v33 }
  0x62   : > { %439 = vst [vmem:[#allocation4] sm:$0x1] %v438_v35 }
  0x66   : > { %v630_v37 = vld [vmem:[#allocation2] ss:$0 sm:$0xff]  ;;  %v631_v39 = vld [vmem:[#allocation3] ss:$0 sm:$0xff] }
  0x67   : > { %v455_v41 = vsel %vm447_vm1, %v630_v37, 0.0  ;;  %v464_v42 = vsel %vm456_vm2, %v631_v39, 0.0 }
  0x68   : > { %v465_v44 = vadd.f32 %v464_v42, %v455_v41 }
  0x69   : > { %v632_v40 = vld [vmem:[#allocation4] ss:$0 sm:$0xff] }
  0x6a   : > { %v474_v43 = vsel %vm466_vm3, %v632_v40, 0.0 }
  0x6b   : > { %v475_v45 = vadd.f32 %v474_v43, %v465_v44 }
  0x6d   : > { %476 = vst [vmem:[#allocation11] sm:$0xff] %v475_v45 }
  0x6e PF: > { %p661_p6 = scmp.eq.s32.totalorder %s941_s21, 1  ;;  %s886_s18 = smov [#allocation11]  }
  0x6f   : > { %s486_s25 = sshll.u32 %s886_s18, 4  ;;  %s487_s25 = int_to_ptr.vmem [resolvable:$true] %s486_s25 }
  0x70   : > { %s798_s8 = scalar_lea.vmem %s487_s25, 128  ;;  %p805_p3 = scmp.lt.s32.totalorder %s487_s25, %s487_s25 }
  0x71   : > { %p799_p0 = scmp.ne.s32.totalorder %s487_s25, %s798_s8  ;;  %p806_p4 = scmp.lt.s32.totalorder %s798_s8, %s798_s8 }
  0x73   : > { %p800_p1 = pnand %p799_p0, %p661_p6  ;;  %p807_p5 = por %p806_p4, %p805_p3 }
  0x75   : > { %p801_p2 = pneg %p800_p1 }
  0x77   : > { %p808_p8 = pnand %p807_p5, %p801_p2 }
  0x79   : > { %811 = shalt.err (!%p808_p8)
}
  0x7a   : > { %647 = dma.vmem_to_hbm [thread:$0]  (%p661_p6), %s487_s25, 128, %s1074_s4, [#allocation7]  }
  0x7b   : > { %855 = dma.done.wait (%p661_p6), [#allocation7], 128  }
  0x7c   : > { %857 = vsyncadd (%p661_p6), [#allocation7], 4294967168 }
  0x7d PF: > { %s21_s20 = sadd.s32 1, %s880_s20   ;;  %s1080_s15 = smov %s864_s16 }
  0x7e   : > { %p18_p11 = scmp.ge.s32.totalorder %s21_s20, 4   ;;  %s1081_s16 = smov %s868_s17 }
  0x7f   : > { %s1082_s17 = smov %s960_s26  ;;  %s1083_s18 = smov %s876_s19 }
  0x80   : > { %s1084_s19 = smov %s1086_s22  ;;  %20 = sbr.rel (!%p18_p11) target bundleno = 7 (0x7), region = 109 }
  0x85   :  { %499 = vsyncpa [#allocation6], 1 }
  0x86   :  { %501 = vsyncpa [#allocation6 + $0x1], 1 }
  0x87   :  { %502 = vsyncpa [#allocation9], 1 }
  0x88   :  { %504 = vsyncpa [#allocation9 + $0x1], 1 }
  0x89   :  { %505 = vsyncpa [#allocation7], 1 }
  0x8a   :  { %507 = vsyncpa [#allocation7 + $0x1], 1 }

</bundles_post_ra>
